<compile_context>
chip_gen: v5e
topology: v5e:2x2
jax: 0.10.0
libtpu: 0.0.40
codegen_flags: <defaults>
</compile_context>

<pallas_src>
import jax
import jax.numpy as jnp
from jax.experimental import pallas as pl
from jax.experimental.pallas import tpu as pltpu


def affine_coupling_kernel(x_ref, ctx_ref, w_ref, b_ref, z_ref, ladj_ref, acc_ref):
    # x_ref, ctx_ref : (1, C, T)  VMEM   channels-first, HW tile on the lane axis
    # w_ref          : (2C, C)    SMEM   1x1-conv weight, (out, in)
    # b_ref          : (2C,)      SMEM   1x1-conv bias
    # z_ref          : (1, C, T)  VMEM
    # ladj_ref       : (1, 1, 1)  VMEM   written only at the last HW step
    # acc_ref        : (1, 1)     VMEM   f32 ladj accumulator across HW tiles
    j = pl.program_id(1)
    C = x_ref.shape[1]

    @pl.when(j == 0)
    def _init():
        acc_ref[...] = jnp.zeros_like(acc_ref)

    x = x_ref[0]      # (C, T)
    ctx = ctx_ref[0]  # (C, T)

    def st_row(oc):
        # sum_c w[oc, c] * ctx[c, :] + b[oc]  -- scalar-broadcast FMAs on the VPU
        r = w_ref[oc, 0] * ctx[0:1, :]
        for c in range(1, C):
            r = r + w_ref[oc, c] * ctx[c:c + 1, :]
        return r + b_ref[oc]

    log_s = jnp.concatenate([st_row(oc) for oc in range(C)], axis=0)       # (C, T)
    t = jnp.concatenate([st_row(C + oc) for oc in range(C)], axis=0)       # (C, T)

    # Elementwise affine coupling (VPU) with exp on the EUP slot.
    z_ref[0] = ((x + t) * jnp.exp(log_s)).astype(z_ref.dtype)

    # Partial ladj for this HW tile (XLU lane/sublane reduce), accumulate in VMEM.
    acc_ref[...] += jnp.sum(log_s, keepdims=True)

    @pl.when(j == pl.num_programs(1) - 1)
    def _finalize():
        ladj_ref[0] = acc_ref[...].astype(ladj_ref.dtype)


def affine_coupling_forward(x, context, conv_w, conv_b, *, tile_hw=None):
    """x, context: (N, C, H, W) f32.  conv_w: (2C, C), conv_b: (2C,)."""
    N, C, H, W = x.shape
    HW = H * W
    C2 = conv_w.shape[0]
    assert conv_w.shape == (C2, C) and C2 == 2 * C and conv_b.shape == (C2,)

    if tile_hw is None:
        # Largest lane-aligned divisor of HW (amortizes per-grid-step overhead);
        # falls back to the full HW extent if nothing divides cleanly.
        tile_hw = HW
        for cand in (2048, 1024, 512, 256, 128):
            if HW % cand == 0:
                tile_hw = cand
                break
    assert HW % tile_hw == 0 and (tile_hw % 128 == 0 or tile_hw == HW)
    n_hw = HW // tile_hw

    # NCHW -> (N, C, HW): a free reshape, no transpose / extra HBM pass.
    x_f = x.reshape(N, C, HW)
    c_f = context.reshape(N, C, HW)

    block = (1, C, tile_hw)
    z_f, ladj = pl.pallas_call(
        affine_coupling_kernel,
        out_shape=(
            jax.ShapeDtypeStruct((N, C, HW), x.dtype),
            jax.ShapeDtypeStruct((N, 1, 1), jnp.float32),
        ),
        grid=(N, n_hw),
        in_specs=[
            pl.BlockSpec(block, lambda n, j: (n, 0, j)),
            pl.BlockSpec(block, lambda n, j: (n, 0, j)),
            pl.BlockSpec(memory_space=pltpu.MemorySpace.SMEM),   # conv weight (small)
            pl.BlockSpec(memory_space=pltpu.MemorySpace.SMEM),   # conv bias
        ],
        out_specs=(
            pl.BlockSpec(block, lambda n, j: (n, 0, j)),
            pl.BlockSpec((1, 1, 1), lambda n, j: (n, 0, 0)),     # resident over HW axis
        ),
        scratch_shapes=[pltpu.VMEM((1, 1), jnp.float32)],
        compiler_params=pltpu.CompilerParams(
            dimension_semantics=("parallel", "arbitrary"),
            vmem_limit_bytes=32 * 1024 * 1024,
        ),
    )(x_f, c_f, conv_w, conv_b)

    z = z_f.reshape(N, C, H, W)   # free reshape back to NCHW
    return z, ladj.reshape(N)


if __name__ == "__main__":
    N, C, H, W = 2, 4, 16, 16
    key = jax.random.PRNGKey(0)
    kx, kc, kw, kb = jax.random.split(key, 4)

    x = jax.random.normal(kx, (N, C, H, W), jnp.float32)
    context = jax.random.normal(kc, (N, C, H, W), jnp.float32)
    conv_w = jax.random.normal(kw, (2 * C, C), jnp.float32) * 0.1   # (out, in) 1x1 conv
    conv_b = jax.random.normal(kb, (2 * C,), jnp.float32) * 0.1

    # tile_hw=128 (HW=256 -> 2 HW steps) exercises the multi-step ladj accumulator.
    z, ladj = affine_coupling_forward(x, context, conv_w, conv_b, tile_hw=128)
    jax.block_until_ready((z, ladj))

    # Pure-JAX reference (NCHW semantics, matching PyTorch).
    st_ref = jnp.einsum("nchw,oc->nohw", context, conv_w) + conv_b[None, :, None, None]
    log_s_ref, t_ref = st_ref[:, :C], st_ref[:, C:]
    z_ref = (x + t_ref) * jnp.exp(log_s_ref)
    ladj_ref = jnp.sum(log_s_ref, axis=(1, 2, 3))

    assert z.shape == (N, C, H, W) and ladj.shape == (N,)
    assert jnp.allclose(z, z_ref, atol=1e-4, rtol=1e-4)
    assert jnp.allclose(ladj, ladj_ref, atol=1e-3, rtol=1e-4)
    print("KERNEL_OK")
</pallas_src>

<mosaic_0001>
module attributes {stable_mosaic.version = 11 : i64} {
  func.func @affine_coupling_kernel(%arg0: i32, %arg1: i32, %arg2: memref<1x4x128xf32, #tpu.memory_space<vmem>>, %arg3: memref<1x4x128xf32, #tpu.memory_space<vmem>>, %arg4: memref<8x4xf32, #tpu.memory_space<smem>>, %arg5: memref<8xf32, #tpu.memory_space<smem>>, %arg6: memref<1x4x128xf32, #tpu.memory_space<vmem>>, %arg7: memref<1x1x1xf32, #tpu.memory_space<vmem>>, %arg8: memref<1x1xf32, #tpu.memory_space<vmem>>) attributes {dimension_semantics = [#tpu.dimension_semantics<parallel>, #tpu.dimension_semantics<arbitrary>], iteration_bounds = array<i64: 2, 2>, scalar_prefetch = 0 : i64, scratch_operands = 1 : i64, tpu.core_type = #tpu.core_type<tc>, window_params = [{transform_indices = @transform_0, window_bounds = array<i64: 1, 4, 128>}, {transform_indices = @transform_1, window_bounds = array<i64: 1, 4, 128>}, {transform_indices = @transform_2, window_bounds = array<i64: 8, 4>}, {transform_indices = @transform_3, window_bounds = array<i64: 8>}, {transform_indices = @transform_4, window_bounds = array<i64: 1, 4, 128>}, {transform_indices = @transform_5, window_bounds = array<i64: 1, 1, 1>}]} {
    %c0_i32 = arith.constant 0 : i32
    %0 = arith.cmpi eq, %arg1, %c0_i32 : i32
    %1 = arith.extui %0 : i1 to i32
    %c0_i32_0 = arith.constant 0 : i32
    %2 = arith.cmpi ne, %1, %c0_i32_0 : i32
    scf.if %2 {
      %cst_79 = arith.constant 0.000000e+00 : f32
      %202 = vector.broadcast %cst_79 : f32 to vector<1x1xf32>
      %c0_80 = arith.constant 0 : index
      %c0_81 = arith.constant 0 : index
      %203 = vector.load %arg8[%c0_80, %c0_81] : memref<1x1xf32, #tpu.memory_space<vmem>>, vector<1x1xf32>
      tpu.vector_store %arg8[%c0_80, %c0_81], %202 {strides = array<i32>} : memref<1x1xf32, #tpu.memory_space<vmem>>, vector<1x1xf32>,
    } else {
    }
    %c0 = arith.constant 0 : index
    %c0_1 = arith.constant 0 : index
    %c0_2 = arith.constant 0 : index
    %3 = vector.load %arg2[%c0, %c0_1, %c0_2] : memref<1x4x128xf32, #tpu.memory_space<vmem>>, vector<1x4x128xf32>
    %4 = vector.shape_cast %3 : vector<1x4x128xf32> to vector<4x128xf32>
    %c0_3 = arith.constant 0 : index
    %c0_4 = arith.constant 0 : index
    %c0_5 = arith.constant 0 : index
    %5 = vector.load %arg3[%c0_3, %c0_4, %c0_5] : memref<1x4x128xf32, #tpu.memory_space<vmem>>, vector<1x4x128xf32>
    %6 = vector.shape_cast %5 : vector<1x4x128xf32> to vector<4x128xf32>
    %c0_6 = arith.constant 0 : index
    %c0_7 = arith.constant 0 : index
    %7 = memref.load %arg4[%c0_6, %c0_7] : memref<8x4xf32, #tpu.memory_space<smem>>
    %8 = vector.extract_strided_slice %6 {offsets = [0, 0], sizes = [1, 128], strides = [1, 1]} : vector<4x128xf32> to vector<1x128xf32>
    %9 = vector.broadcast %7 : f32 to vector<1x128xf32>
    %10 = arith.mulf %9, %8 : vector<1x128xf32>
    %c0_8 = arith.constant 0 : index
    %c1 = arith.constant 1 : index
    %11 = memref.load %arg4[%c0_8, %c1] : memref<8x4xf32, #tpu.memory_space<smem>>
    %12 = vector.extract_strided_slice %6 {offsets = [1, 0], sizes = [1, 128], strides = [1, 1]} : vector<4x128xf32> to vector<1x128xf32>
    %13 = vector.broadcast %11 : f32 to vector<1x128xf32>
    %14 = arith.mulf %13, %12 : vector<1x128xf32>
    %15 = arith.addf %10, %14 : vector<1x128xf32>
    %c0_9 = arith.constant 0 : index
    %c2 = arith.constant 2 : index
    %16 = memref.load %arg4[%c0_9, %c2] : memref<8x4xf32, #tpu.memory_space<smem>>
    %17 = vector.extract_strided_slice %6 {offsets = [2, 0], sizes = [1, 128], strides = [1, 1]} : vector<4x128xf32> to vector<1x128xf32>
    %18 = vector.broadcast %16 : f32 to vector<1x128xf32>
    %19 = arith.mulf %18, %17 : vector<1x128xf32>
    %20 = arith.addf %15, %19 : vector<1x128xf32>
    %c0_10 = arith.constant 0 : index
    %c3 = arith.constant 3 : index
    %21 = memref.load %arg4[%c0_10, %c3] : memref<8x4xf32, #tpu.memory_space<smem>>
    %22 = vector.extract_strided_slice %6 {offsets = [3, 0], sizes = [1, 128], strides = [1, 1]} : vector<4x128xf32> to vector<1x128xf32>
    %23 = vector.broadcast %21 : f32 to vector<1x128xf32>
    %24 = arith.mulf %23, %22 : vector<1x128xf32>
    %25 = arith.addf %20, %24 : vector<1x128xf32>
    %c0_11 = arith.constant 0 : index
    %26 = memref.load %arg5[%c0_11] : memref<8xf32, #tpu.memory_space<smem>>
    %27 = vector.broadcast %26 : f32 to vector<1x128xf32>
    %28 = arith.addf %25, %27 : vector<1x128xf32>
    %c1_12 = arith.constant 1 : index
    %c0_13 = arith.constant 0 : index
    %29 = memref.load %arg4[%c1_12, %c0_13] : memref<8x4xf32, #tpu.memory_space<smem>>
    %30 = vector.extract_strided_slice %6 {offsets = [0, 0], sizes = [1, 128], strides = [1, 1]} : vector<4x128xf32> to vector<1x128xf32>
    %31 = vector.broadcast %29 : f32 to vector<1x128xf32>
    %32 = arith.mulf %31, %30 : vector<1x128xf32>
    %c1_14 = arith.constant 1 : index
    %c1_15 = arith.constant 1 : index
    %33 = memref.load %arg4[%c1_14, %c1_15] : memref<8x4xf32, #tpu.memory_space<smem>>
    %34 = vector.extract_strided_slice %6 {offsets = [1, 0], sizes = [1, 128], strides = [1, 1]} : vector<4x128xf32> to vector<1x128xf32>
    %35 = vector.broadcast %33 : f32 to vector<1x128xf32>
    %36 = arith.mulf %35, %34 : vector<1x128xf32>
    %37 = arith.addf %32, %36 : vector<1x128xf32>
    %c1_16 = arith.constant 1 : index
    %c2_17 = arith.constant 2 : index
    %38 = memref.load %arg4[%c1_16, %c2_17] : memref<8x4xf32, #tpu.memory_space<smem>>
    %39 = vector.extract_strided_slice %6 {offsets = [2, 0], sizes = [1, 128], strides = [1, 1]} : vector<4x128xf32> to vector<1x128xf32>
    %40 = vector.broadcast %38 : f32 to vector<1x128xf32>
    %41 = arith.mulf %40, %39 : vector<1x128xf32>
    %42 = arith.addf %37, %41 : vector<1x128xf32>
    %c1_18 = arith.constant 1 : index
    %c3_19 = arith.constant 3 : index
    %43 = memref.load %arg4[%c1_18, %c3_19] : memref<8x4xf32, #tpu.memory_space<smem>>
    %44 = vector.extract_strided_slice %6 {offsets = [3, 0], sizes = [1, 128], strides = [1, 1]} : vector<4x128xf32> to vector<1x128xf32>
    %45 = vector.broadcast %43 : f32 to vector<1x128xf32>
    %46 = arith.mulf %45, %44 : vector<1x128xf32>
    %47 = arith.addf %42, %46 : vector<1x128xf32>
    %c1_20 = arith.constant 1 : index
    %48 = memref.load %arg5[%c1_20] : memref<8xf32, #tpu.memory_space<smem>>
    %49 = vector.broadcast %48 : f32 to vector<1x128xf32>
    %50 = arith.addf %47, %49 : vector<1x128xf32>
    %c2_21 = arith.constant 2 : index
    %c0_22 = arith.constant 0 : index
    %51 = memref.load %arg4[%c2_21, %c0_22] : memref<8x4xf32, #tpu.memory_space<smem>>
    %52 = vector.extract_strided_slice %6 {offsets = [0, 0], sizes = [1, 128], strides = [1, 1]} : vector<4x128xf32> to vector<1x128xf32>
    %53 = vector.broadcast %51 : f32 to vector<1x128xf32>
    %54 = arith.mulf %53, %52 : vector<1x128xf32>
    %c2_23 = arith.constant 2 : index
    %c1_24 = arith.constant 1 : index
    %55 = memref.load %arg4[%c2_23, %c1_24] : memref<8x4xf32, #tpu.memory_space<smem>>
    %56 = vector.extract_strided_slice %6 {offsets = [1, 0], sizes = [1, 128], strides = [1, 1]} : vector<4x128xf32> to vector<1x128xf32>
    %57 = vector.broadcast %55 : f32 to vector<1x128xf32>
    %58 = arith.mulf %57, %56 : vector<1x128xf32>
    %59 = arith.addf %54, %58 : vector<1x128xf32>
    %c2_25 = arith.constant 2 : index
    %c2_26 = arith.constant 2 : index
    %60 = memref.load %arg4[%c2_25, %c2_26] : memref<8x4xf32, #tpu.memory_space<smem>>
    %61 = vector.extract_strided_slice %6 {offsets = [2, 0], sizes = [1, 128], strides = [1, 1]} : vector<4x128xf32> to vector<1x128xf32>
    %62 = vector.broadcast %60 : f32 to vector<1x128xf32>
    %63 = arith.mulf %62, %61 : vector<1x128xf32>
    %64 = arith.addf %59, %63 : vector<1x128xf32>
    %c2_27 = arith.constant 2 : index
    %c3_28 = arith.constant 3 : index
    %65 = memref.load %arg4[%c2_27, %c3_28] : memref<8x4xf32, #tpu.memory_space<smem>>
    %66 = vector.extract_strided_slice %6 {offsets = [3, 0], sizes = [1, 128], strides = [1, 1]} : vector<4x128xf32> to vector<1x128xf32>
    %67 = vector.broadcast %65 : f32 to vector<1x128xf32>
    %68 = arith.mulf %67, %66 : vector<1x128xf32>
    %69 = arith.addf %64, %68 : vector<1x128xf32>
    %c2_29 = arith.constant 2 : index
    %70 = memref.load %arg5[%c2_29] : memref<8xf32, #tpu.memory_space<smem>>
    %71 = vector.broadcast %70 : f32 to vector<1x128xf32>
    %72 = arith.addf %69, %71 : vector<1x128xf32>
    %c3_30 = arith.constant 3 : index
    %c0_31 = arith.constant 0 : index
    %73 = memref.load %arg4[%c3_30, %c0_31] : memref<8x4xf32, #tpu.memory_space<smem>>
    %74 = vector.extract_strided_slice %6 {offsets = [0, 0], sizes = [1, 128], strides = [1, 1]} : vector<4x128xf32> to vector<1x128xf32>
    %75 = vector.broadcast %73 : f32 to vector<1x128xf32>
    %76 = arith.mulf %75, %74 : vector<1x128xf32>
    %c3_32 = arith.constant 3 : index
    %c1_33 = arith.constant 1 : index
    %77 = memref.load %arg4[%c3_32, %c1_33] : memref<8x4xf32, #tpu.memory_space<smem>>
    %78 = vector.extract_strided_slice %6 {offsets = [1, 0], sizes = [1, 128], strides = [1, 1]} : vector<4x128xf32> to vector<1x128xf32>
    %79 = vector.broadcast %77 : f32 to vector<1x128xf32>
    %80 = arith.mulf %79, %78 : vector<1x128xf32>
    %81 = arith.addf %76, %80 : vector<1x128xf32>
    %c3_34 = arith.constant 3 : index
    %c2_35 = arith.constant 2 : index
    %82 = memref.load %arg4[%c3_34, %c2_35] : memref<8x4xf32, #tpu.memory_space<smem>>
    %83 = vector.extract_strided_slice %6 {offsets = [2, 0], sizes = [1, 128], strides = [1, 1]} : vector<4x128xf32> to vector<1x128xf32>
    %84 = vector.broadcast %82 : f32 to vector<1x128xf32>
    %85 = arith.mulf %84, %83 : vector<1x128xf32>
    %86 = arith.addf %81, %85 : vector<1x128xf32>
    %c3_36 = arith.constant 3 : index
    %c3_37 = arith.constant 3 : index
    %87 = memref.load %arg4[%c3_36, %c3_37] : memref<8x4xf32, #tpu.memory_space<smem>>
    %88 = vector.extract_strided_slice %6 {offsets = [3, 0], sizes = [1, 128], strides = [1, 1]} : vector<4x128xf32> to vector<1x128xf32>
    %89 = vector.broadcast %87 : f32 to vector<1x128xf32>
    %90 = arith.mulf %89, %88 : vector<1x128xf32>
    %91 = arith.addf %86, %90 : vector<1x128xf32>
    %c3_38 = arith.constant 3 : index
    %92 = memref.load %arg5[%c3_38] : memref<8xf32, #tpu.memory_space<smem>>
    %93 = vector.broadcast %92 : f32 to vector<1x128xf32>
    %94 = arith.addf %91, %93 : vector<1x128xf32>
    %95 = tpu.concatenate %28, %50, %72, %94 in 0 : vector<1x128xf32>, vector<1x128xf32>, vector<1x128xf32>, vector<1x128xf32> -> vector<4x128xf32>
    %c4 = arith.constant 4 : index
    %c0_39 = arith.constant 0 : index
    %96 = memref.load %arg4[%c4, %c0_39] : memref<8x4xf32, #tpu.memory_space<smem>>
    %97 = vector.extract_strided_slice %6 {offsets = [0, 0], sizes = [1, 128], strides = [1, 1]} : vector<4x128xf32> to vector<1x128xf32>
    %98 = vector.broadcast %96 : f32 to vector<1x128xf32>
    %99 = arith.mulf %98, %97 : vector<1x128xf32>
    %c4_40 = arith.constant 4 : index
    %c1_41 = arith.constant 1 : index
    %100 = memref.load %arg4[%c4_40, %c1_41] : memref<8x4xf32, #tpu.memory_space<smem>>
    %101 = vector.extract_strided_slice %6 {offsets = [1, 0], sizes = [1, 128], strides = [1, 1]} : vector<4x128xf32> to vector<1x128xf32>
    %102 = vector.broadcast %100 : f32 to vector<1x128xf32>
    %103 = arith.mulf %102, %101 : vector<1x128xf32>
    %104 = arith.addf %99, %103 : vector<1x128xf32>
    %c4_42 = arith.constant 4 : index
    %c2_43 = arith.constant 2 : index
    %105 = memref.load %arg4[%c4_42, %c2_43] : memref<8x4xf32, #tpu.memory_space<smem>>
    %106 = vector.extract_strided_slice %6 {offsets = [2, 0], sizes = [1, 128], strides = [1, 1]} : vector<4x128xf32> to vector<1x128xf32>
    %107 = vector.broadcast %105 : f32 to vector<1x128xf32>
    %108 = arith.mulf %107, %106 : vector<1x128xf32>
    %109 = arith.addf %104, %108 : vector<1x128xf32>
    %c4_44 = arith.constant 4 : index
    %c3_45 = arith.constant 3 : index
    %110 = memref.load %arg4[%c4_44, %c3_45] : memref<8x4xf32, #tpu.memory_space<smem>>
    %111 = vector.extract_strided_slice %6 {offsets = [3, 0], sizes = [1, 128], strides = [1, 1]} : vector<4x128xf32> to vector<1x128xf32>
    %112 = vector.broadcast %110 : f32 to vector<1x128xf32>
    %113 = arith.mulf %112, %111 : vector<1x128xf32>
    %114 = arith.addf %109, %113 : vector<1x128xf32>
    %c4_46 = arith.constant 4 : index
    %115 = memref.load %arg5[%c4_46] : memref<8xf32, #tpu.memory_space<smem>>
    %116 = vector.broadcast %115 : f32 to vector<1x128xf32>
    %117 = arith.addf %114, %116 : vector<1x128xf32>
    %c5 = arith.constant 5 : index
    %c0_47 = arith.constant 0 : index
    %118 = memref.load %arg4[%c5, %c0_47] : memref<8x4xf32, #tpu.memory_space<smem>>
    %119 = vector.extract_strided_slice %6 {offsets = [0, 0], sizes = [1, 128], strides = [1, 1]} : vector<4x128xf32> to vector<1x128xf32>
    %120 = vector.broadcast %118 : f32 to vector<1x128xf32>
    %121 = arith.mulf %120, %119 : vector<1x128xf32>
    %c5_48 = arith.constant 5 : index
    %c1_49 = arith.constant 1 : index
    %122 = memref.load %arg4[%c5_48, %c1_49] : memref<8x4xf32, #tpu.memory_space<smem>>
    %123 = vector.extract_strided_slice %6 {offsets = [1, 0], sizes = [1, 128], strides = [1, 1]} : vector<4x128xf32> to vector<1x128xf32>
    %124 = vector.broadcast %122 : f32 to vector<1x128xf32>
    %125 = arith.mulf %124, %123 : vector<1x128xf32>
    %126 = arith.addf %121, %125 : vector<1x128xf32>
    %c5_50 = arith.constant 5 : index
    %c2_51 = arith.constant 2 : index
    %127 = memref.load %arg4[%c5_50, %c2_51] : memref<8x4xf32, #tpu.memory_space<smem>>
    %128 = vector.extract_strided_slice %6 {offsets = [2, 0], sizes = [1, 128], strides = [1, 1]} : vector<4x128xf32> to vector<1x128xf32>
    %129 = vector.broadcast %127 : f32 to vector<1x128xf32>
    %130 = arith.mulf %129, %128 : vector<1x128xf32>
    %131 = arith.addf %126, %130 : vector<1x128xf32>
    %c5_52 = arith.constant 5 : index
    %c3_53 = arith.constant 3 : index
    %132 = memref.load %arg4[%c5_52, %c3_53] : memref<8x4xf32, #tpu.memory_space<smem>>
    %133 = vector.extract_strided_slice %6 {offsets = [3, 0], sizes = [1, 128], strides = [1, 1]} : vector<4x128xf32> to vector<1x128xf32>
    %134 = vector.broadcast %132 : f32 to vector<1x128xf32>
    %135 = arith.mulf %134, %133 : vector<1x128xf32>
    %136 = arith.addf %131, %135 : vector<1x128xf32>
    %c5_54 = arith.constant 5 : index
    %137 = memref.load %arg5[%c5_54] : memref<8xf32, #tpu.memory_space<smem>>
    %138 = vector.broadcast %137 : f32 to vector<1x128xf32>
    %139 = arith.addf %136, %138 : vector<1x128xf32>
    %c6 = arith.constant 6 : index
    %c0_55 = arith.constant 0 : index
    %140 = memref.load %arg4[%c6, %c0_55] : memref<8x4xf32, #tpu.memory_space<smem>>
    %141 = vector.extract_strided_slice %6 {offsets = [0, 0], sizes = [1, 128], strides = [1, 1]} : vector<4x128xf32> to vector<1x128xf32>
    %142 = vector.broadcast %140 : f32 to vector<1x128xf32>
    %143 = arith.mulf %142, %141 : vector<1x128xf32>
    %c6_56 = arith.constant 6 : index
    %c1_57 = arith.constant 1 : index
    %144 = memref.load %arg4[%c6_56, %c1_57] : memref<8x4xf32, #tpu.memory_space<smem>>
    %145 = vector.extract_strided_slice %6 {offsets = [1, 0], sizes = [1, 128], strides = [1, 1]} : vector<4x128xf32> to vector<1x128xf32>
    %146 = vector.broadcast %144 : f32 to vector<1x128xf32>
    %147 = arith.mulf %146, %145 : vector<1x128xf32>
    %148 = arith.addf %143, %147 : vector<1x128xf32>
    %c6_58 = arith.constant 6 : index
    %c2_59 = arith.constant 2 : index
    %149 = memref.load %arg4[%c6_58, %c2_59] : memref<8x4xf32, #tpu.memory_space<smem>>
    %150 = vector.extract_strided_slice %6 {offsets = [2, 0], sizes = [1, 128], strides = [1, 1]} : vector<4x128xf32> to vector<1x128xf32>
    %151 = vector.broadcast %149 : f32 to vector<1x128xf32>
    %152 = arith.mulf %151, %150 : vector<1x128xf32>
    %153 = arith.addf %148, %152 : vector<1x128xf32>
    %c6_60 = arith.constant 6 : index
    %c3_61 = arith.constant 3 : index
    %154 = memref.load %arg4[%c6_60, %c3_61] : memref<8x4xf32, #tpu.memory_space<smem>>
    %155 = vector.extract_strided_slice %6 {offsets = [3, 0], sizes = [1, 128], strides = [1, 1]} : vector<4x128xf32> to vector<1x128xf32>
    %156 = vector.broadcast %154 : f32 to vector<1x128xf32>
    %157 = arith.mulf %156, %155 : vector<1x128xf32>
    %158 = arith.addf %153, %157 : vector<1x128xf32>
    %c6_62 = arith.constant 6 : index
    %159 = memref.load %arg5[%c6_62] : memref<8xf32, #tpu.memory_space<smem>>
    %160 = vector.broadcast %159 : f32 to vector<1x128xf32>
    %161 = arith.addf %158, %160 : vector<1x128xf32>
    %c7 = arith.constant 7 : index
    %c0_63 = arith.constant 0 : index
    %162 = memref.load %arg4[%c7, %c0_63] : memref<8x4xf32, #tpu.memory_space<smem>>
    %163 = vector.extract_strided_slice %6 {offsets = [0, 0], sizes = [1, 128], strides = [1, 1]} : vector<4x128xf32> to vector<1x128xf32>
    %164 = vector.broadcast %162 : f32 to vector<1x128xf32>
    %165 = arith.mulf %164, %163 : vector<1x128xf32>
    %c7_64 = arith.constant 7 : index
    %c1_65 = arith.constant 1 : index
    %166 = memref.load %arg4[%c7_64, %c1_65] : memref<8x4xf32, #tpu.memory_space<smem>>
    %167 = vector.extract_strided_slice %6 {offsets = [1, 0], sizes = [1, 128], strides = [1, 1]} : vector<4x128xf32> to vector<1x128xf32>
    %168 = vector.broadcast %166 : f32 to vector<1x128xf32>
    %169 = arith.mulf %168, %167 : vector<1x128xf32>
    %170 = arith.addf %165, %169 : vector<1x128xf32>
    %c7_66 = arith.constant 7 : index
    %c2_67 = arith.constant 2 : index
    %171 = memref.load %arg4[%c7_66, %c2_67] : memref<8x4xf32, #tpu.memory_space<smem>>
    %172 = vector.extract_strided_slice %6 {offsets = [2, 0], sizes = [1, 128], strides = [1, 1]} : vector<4x128xf32> to vector<1x128xf32>
    %173 = vector.broadcast %171 : f32 to vector<1x128xf32>
    %174 = arith.mulf %173, %172 : vector<1x128xf32>
    %175 = arith.addf %170, %174 : vector<1x128xf32>
    %c7_68 = arith.constant 7 : index
    %c3_69 = arith.constant 3 : index
    %176 = memref.load %arg4[%c7_68, %c3_69] : memref<8x4xf32, #tpu.memory_space<smem>>
    %177 = vector.extract_strided_slice %6 {offsets = [3, 0], sizes = [1, 128], strides = [1, 1]} : vector<4x128xf32> to vector<1x128xf32>
    %178 = vector.broadcast %176 : f32 to vector<1x128xf32>
    %179 = arith.mulf %178, %177 : vector<1x128xf32>
    %180 = arith.addf %175, %179 : vector<1x128xf32>
    %c7_70 = arith.constant 7 : index
    %181 = memref.load %arg5[%c7_70] : memref<8xf32, #tpu.memory_space<smem>>
    %182 = vector.broadcast %181 : f32 to vector<1x128xf32>
    %183 = arith.addf %180, %182 : vector<1x128xf32>
    %184 = tpu.concatenate %117, %139, %161, %183 in 0 : vector<1x128xf32>, vector<1x128xf32>, vector<1x128xf32>, vector<1x128xf32> -> vector<4x128xf32>
    %185 = arith.addf %4, %184 : vector<4x128xf32>
    %186 = math.exp %95 : vector<4x128xf32>
    %187 = arith.mulf %185, %186 : vector<4x128xf32>
    %c0_71 = arith.constant 0 : index
    %c0_72 = arith.constant 0 : index
    %c0_73 = arith.constant 0 : index
    %188 = vector.load %arg6[%c0_71, %c0_72, %c0_73] : memref<1x4x128xf32, #tpu.memory_space<vmem>>, vector<1x4x128xf32>
    %189 = vector.shape_cast %188 : vector<1x4x128xf32> to vector<4x128xf32>
    %190 = vector.shape_cast %187 : vector<4x128xf32> to vector<1x4x128xf32>
    tpu.vector_store %arg6[%c0_71, %c0_72, %c0_73], %190 {strides = array<i32>} : memref<1x4x128xf32, #tpu.memory_space<vmem>>, vector<1x4x128xf32>,
    %c0_74 = arith.constant 0 : index
    %c0_75 = arith.constant 0 : index
    %191 = vector.load %arg8[%c0_74, %c0_75] : memref<1x1xf32, #tpu.memory_space<vmem>>, vector<1x1xf32>
    %192 = vector.shape_cast %95 : vector<4x128xf32> to vector<1x4x128xf32>
    %cst = arith.constant dense<0.000000e+00> : vector<1xf32>
    %193 = vector.multi_reduction <add>, %192, %cst [1, 2] : vector<1x4x128xf32> to vector<1xf32>
    %194 = vector.shape_cast %193 : vector<1xf32> to vector<1x1x1xf32>
    %195 = vector.extract %194[0, 0, 0] : f32 from vector<1x1x1xf32>
    %196 = vector.broadcast %195 : f32 to vector<1x1xf32>
    %197 = arith.addf %191, %196 : vector<1x1xf32>
    %c0_76 = arith.constant 0 : index
    %c0_77 = arith.constant 0 : index
    %198 = vector.load %arg8[%c0_76, %c0_77] : memref<1x1xf32, #tpu.memory_space<vmem>>, vector<1x1xf32>
    tpu.vector_store %arg8[%c0_76, %c0_77], %197 {strides = array<i32>} : memref<1x1xf32, #tpu.memory_space<vmem>>, vector<1x1xf32>,
    %c1_i32 = arith.constant 1 : i32
    %199 = arith.cmpi eq, %arg1, %c1_i32 : i32
    %200 = arith.extui %199 : i1 to i32
    %c0_i32_78 = arith.constant 0 : i32
    %201 = arith.cmpi ne, %200, %c0_i32_78 : i32
    scf.if %201 {
      %c0_79 = arith.constant 0 : index
      %c0_80 = arith.constant 0 : index
      %202 = vector.load %arg8[%c0_79, %c0_80] : memref<1x1xf32, #tpu.memory_space<vmem>>, vector<1x1xf32>
      %c0_81 = arith.constant 0 : index
      %c0_82 = arith.constant 0 : index
      %c0_83 = arith.constant 0 : index
      %203 = vector.load %arg7[%c0_81, %c0_82, %c0_83] : memref<1x1x1xf32, #tpu.memory_space<vmem>>, vector<1x1x1xf32>
      %204 = vector.shape_cast %203 : vector<1x1x1xf32> to vector<1x1xf32>
      %205 = vector.shape_cast %202 : vector<1x1xf32> to vector<1x1x1xf32>
      tpu.vector_store %arg7[%c0_81, %c0_82, %c0_83], %205 {strides = array<i32>} : memref<1x1x1xf32, #tpu.memory_space<vmem>>, vector<1x1x1xf32>,
    } else {
    }
    return
  }
  func.func @transform_0(%arg0: i32, %arg1: i32) -> (i32, i32, i32) {
    %c0_i32 = arith.constant 0 : i32
    %c0_i32_0 = arith.constant 0 : i32
    return %arg0, %c0_i32, %arg1 : i32, i32, i32
  }
  func.func @transform_1(%arg0: i32, %arg1: i32) -> (i32, i32, i32) {
    %c0_i32 = arith.constant 0 : i32
    %c0_i32_0 = arith.constant 0 : i32
    return %arg0, %c0_i32, %arg1 : i32, i32, i32
  }
  func.func @transform_2(%arg0: i32, %arg1: i32) -> (i32, i32) {
    %c0_i32 = arith.constant 0 : i32
    %c0_i32_0 = arith.constant 0 : i32
    %c0_i32_1 = arith.constant 0 : i32
    return %c0_i32, %c0_i32_0 : i32, i32
  }
  func.func @transform_3(%arg0: i32, %arg1: i32) -> i32 {
    %c0_i32 = arith.constant 0 : i32
    %c0_i32_0 = arith.constant 0 : i32
    return %c0_i32 : i32
  }
  func.func @transform_4(%arg0: i32, %arg1: i32) -> (i32, i32, i32) {
    %c0_i32 = arith.constant 0 : i32
    %c0_i32_0 = arith.constant 0 : i32
    return %arg0, %c0_i32, %arg1 : i32, i32, i32
  }
  func.func @transform_5(%arg0: i32, %arg1: i32) -> (i32, i32, i32) {
    %c0_i32 = arith.constant 0 : i32
    %c0_i32_0 = arith.constant 0 : i32
    %c0_i32_1 = arith.constant 0 : i32
    return %arg0, %c0_i32, %c0_i32_0 : i32, i32, i32
  }
}

</mosaic_0001>

<bundles_post_ra>
// kernel: tpu_custom_call.1
= control target key start
LH: loop header
LB: loop body
LE: loop exit
PB: predicated region body
PF: predicated region fallthrough
CT: control target
= control target key end

     0   :  { %s1522_s0 = inlined_call_operand.hbm [shape: f32[2,4,256], index: 0, kind: input, shape index: {}]   ;;  %s1523_s1 = inlined_call_operand.hbm [shape: f32[2,4,256], index: 1, kind: input, shape index: {}]   ;;  %s1524_s2 = inlined_call_operand.vmem [shape: f32[8,4], index: 2, kind: input, shape index: {}]   ;;  %s1525_s3 = inlined_call_operand.vmem [shape: f32[8], index: 3, kind: input, shape index: {}]   ;;  %s1526_s4 = inlined_call_operand.hbm [shape: f32[2,4,256], index: 4, kind: output, shape index: {0}]   ;;  %s1527_s5 = inlined_call_operand.vmem [shape: f32[2,1,1], index: 5, kind: output, shape index: {1}]  }
   0x1   :  { %1535 = sst [smem:[#allocation23_spill]] %s1524_s2 }
   0x2   :  { %1536 = sst [smem:[#allocation24_spill]] %s1525_s3 }
   0x3   :  { %1537 = sst [smem:[#allocation25_spill]] %s1526_s4 }
   0x4   :  { %11 = vsyncpa [#allocation4], 0 }
   0x5   :  { %13 = vsyncpa [#allocation4 + $0x1], 0 }
   0x6   :  { %14 = vsyncpa [#allocation8], 0 }
   0x7   :  { %16 = vsyncpa [#allocation8 + $0x1], 0 }
   0x8   :  { %17 = vsyncpa [#allocation6], 0 }
   0x9   :  { %18 = vsyncpa [#allocation11], 0 }
   0xa   :  { %19 = vsyncpa [#allocation5], 0 }
   0xb   :  { %21 = vsyncpa [#allocation5 + $0x1], 0  ;;  %s1199_s18 = smov 0   ;;  %s1201_s19 = smov 0  }
   0xc   :  { %s1203_s20 = smov 0   ;;  %s1205_s21 = smov 0  }
   0xd   :  { %s1207_s22 = smov 0   ;;  %s1209_s23 = smov 0  }
   0xe   :  { %s1211_s24 = smov 0   ;;  %s1213_s25 = smov 0  }
   0xf LB: > { %1538 = sst [smem:[#allocation18_spill]] %s1136_s18  ;;  %s792_s26 = sadd.s32 4294967295, %s1164_s25   ;;  %s1164_s25 = sphi %s1213_s25, %s27_s25   ;;  %s1160_s24 = sphi %s1211_s24, %s1564_s24   ;;  %s1156_s23 = sphi %s1209_s23, %s1563_s23   ;;  %s1152_s22 = sphi %s1207_s22, %s1562_s22   ;;  %s1148_s21 = sphi %s1205_s21, %s1561_s21   ;;  %s1144_s20 = sphi %s1203_s20, %s1560_s20   ;;  %s1140_s19 = sphi %s1201_s19, %s1559_s19   ;;  %s1136_s18 = sphi %s1199_s18, %s1558_s18  }
  0x10   : > { %s793_s27 = sadd.s32 4294967294, %s1164_s25   ;;  %p61_p0 = scmp.ne.s32.totalorder %s1140_s19, %s1136_s18 }
  0x11   : > { %p1243_p1 = scmp.eq.s32.totalorder %s792_s26, 0  ;;  %p1247_p2 = scmp.eq.s32.totalorder %s792_s26, 3 }
  0x12   : > { %p163_p3 = scmp.eq.s32.totalorder %s793_s27, 3  ;;  %p794_p5 = scmp.ge.s32.totalorder %s1164_s25, 1 }
  0x13   : > { %p1253_p4 = por %p1243_p1, %p61_p0  ;;  %p196_p7 = scmp.lt.s32.totalorder %s1164_s25, 5 }
  0x14   : > { %p1258_p6 = por %p163_p3, %p61_p0  ;;  %s1544_s2 = sld [smem:[#allocation23_spill]] }
  0x15   : > { %p1266_p8 = pnand %p794_p5, %p196_p7  ;;  %s1546_s3 = sld [smem:[#allocation24_spill]] }
  0x16   : > { %s1542_s6 = scalar_select %p1258_p6, 1, 0 }
  0x17   : > { %p871_p9 = pneg %p1266_p8  ;;  %s1166_s14 = smov [#allocation9]  }
  0x18   : > { %1543 = sst [smem:[#allocation19_spill]] %s1542_s6  ;;  %s1167_s15 = smov [#allocation10]  }
  0x19   : > { %p872_p10 = pnand %p871_p9, %p1243_p1  ;;  %s36_s16 = sadd.s32 1, %s1156_s23 }
  0x1a   : > { %s208_s9 = sshll.u32 %s1544_s2, 4  ;;  %s39_s17 = sadd.s32 1, %s1160_s24  ;;  %s209_s9 = int_to_ptr.vmem [resolvable:$true] %s208_s9 }
  0x1b   : > { %s218_s13 = sshll.u32 %s1546_s3, 4  ;;  %p37_p11 = scmp.ge.s32.totalorder %s36_s16, 2  ;;  %s219_s13 = int_to_ptr.vmem [resolvable:$true] %s218_s13 }
  0x1c   : > { %874 = dma.vmem_to_smem (!%p872_p10), %s209_s9, 128, %s1166_s14, [#allocation6]  }
  0x1d   : > { %877 = dma.vmem_to_smem (!%p872_p10), %s219_s13, 16, %s1167_s15, [#allocation11]  }
  0x1e   : > { %s48_s26 = sadd.s32 1, %s1144_s20  ;;  %p55_p12 = scmp.ne.s32.totalorder %s1144_s20, %s1140_s19 }
  0x1f   : > { %p56_p13 = scmp.eq.s32.totalorder %s1164_s25, 0  ;;  %s1566_s16 = smov (%p37_p11, %s36_s16), 0 }
  0x20   : > { %1547 = sst [smem:[#allocation20_spill]] %s1566_s16  ;;  %s1568_s17 = smov (!%p37_p11, %s39_s17), %s1160_s24 }
  0x21   : > { %s44_s27 = ssub.s32 %s1156_s23, %s1566_s16  ;;  %p1288_p0 = por %p56_p13, %p55_p12 }
  0x22   : > { %p41_p3 = scmp.ge.s32.totalorder %s1568_s17, 2  ;;  %p1294_p5 = por %p1247_p2, %p55_p12 }
  0x23   : > { %p891_p7 = scmp.lt.s32.totalorder %s1164_s25, 4  ;;  %s229_s9 = sand.u32 1, %s1144_s20  }
  0x24   : > { %s1549_s8 = scalar_select %p1294_p5, 1, 0 }
  0x25   : > { %s1570_s17 = smov (%p41_p3, %s1568_s17), 0  ;;  %s798_s11 = sshll.u32 %s229_s9, 2 }
  0x26   : > { %1550 = sst [smem:[#allocation21_spill]] %s1549_s8  ;;  %s43_s12 = ssub.s32 %s1160_s24, %s1570_s17 }
  0x27   : > { %1551 = sst [smem:[#allocation22_spill]] %s1570_s17  ;;  %s45_s13 = sor.u32 %s44_s27, %s43_s12 }
  0x28   : > { %s799_s14 = sshll.u32 %s1160_s24, 1  ;;  %p46_p9 = scmp.eq.s32.totalorder %s45_s13, 0 }
  0x29   : > { %s237_s15 = sadd.s32 %s1156_s23, %s799_s14  ;;  %s233_s3 = scalar_lea.vmem [#allocation3], %s798_s11 }
  0x2a   : > { %s800_s2 = sshll.u32 %s237_s15, 2  ;;  %s243_s29 = sshll.u32 %s233_s3, 4  ;;  %s244_s29 = int_to_ptr.vmem [resolvable:$true] %s243_s29 }
  0x2b   : > { %s1307_s16 = scalar_select %p46_p9, %s1144_s20, %s48_s26  }
  0x2c   : > { %s239_s4 = scalar_lea.hbm %s1522_s0, %s800_s2  ;;  %p879_p2 = pnand %p891_p7, %p1288_p0 }
  0x2d   : > { %s241_s8 = sshll.u32 %s239_s4, 4  ;;  %s230_s17 = scalar_lea.sflag [#allocation4], %s229_s9  ;;  %s242_s8 = int_to_ptr.hbm [resolvable:$true] %s241_s8 }
  0x2e   : > { %881 = dma.hbm_to_vmem [thread:$0]  (!%p879_p2), %s242_s8, 64, %s244_s29, %s230_s17  }
  0x2f   : > { %s260_s13 = scalar_lea.hbm %s1523_s1, %s800_s2  ;;  %s254_s14 = scalar_lea.vmem [#allocation7], %s798_s11 }
  0x30   : > { %s264_s3 = sshll.u32 %s254_s14, 4  ;;  %s262_s26 = sshll.u32 %s260_s13, 4  ;;  %s265_s3 = int_to_ptr.vmem [resolvable:$true] %s264_s3  ;;  %s263_s26 = int_to_ptr.hbm [resolvable:$true] %s262_s26 }
  0x31   : > { %s251_s15 = scalar_lea.sflag [#allocation8], %s229_s9  ;;  %273 = sbr.rel (%p1266_p8) target bundleno = 323 (0x143), region = 36 }
  0x32   : > { %884 = dma.hbm_to_vmem [thread:$0]  (!%p879_p2), %s263_s26, 64, %s265_s3, %s251_s15  }
  0x33   : > { %s1322_s4 = sand.u32 (!%p1266_p8), 1, %s1140_s19  }
  0x34   : > { %s1325_s18 = sshll.u32 (!%p1266_p8), %s1322_s4, 2  ;;  %s276_s2 = scalar_lea.sflag (!%p1266_p8), [#allocation4], %s1322_s4 }
  0x35   : > { %s279_s6 = scalar_lea.vmem (!%p1266_p8), [#allocation3], %s1325_s18 }
  0x36   : > { %1115 = dma.done.wait (%p1253_p4), %s276_s2, 64  }
  0x37   : > { %1117 = vsyncadd (%p1253_p4), %s276_s2, 4294967232  ;;  %s286_s10 = scalar_lea.sflag [#allocation8], %s1322_s4  ;;  %s289_s17 = scalar_lea.vmem [#allocation7], %s1325_s18 }
  0x38   : > { %1119 = dma.done.wait (%p1253_p4), %s286_s10, 64  }
  0x39   : > { %1121 = vsyncadd (%p1253_p4), %s286_s10, 4294967232 }
  0x3a   : > { %1123 = dma.done.wait (%p1243_p1), [#allocation6], 128  }
  0x3b   : > { %1125 = vsyncadd (%p1243_p1), [#allocation6], 4294967168 }
  0x3c   : > { %1127 = dma.done.wait (%p1243_p1), [#allocation11], 16  }
  0x3d   : > { %1129 = vsyncadd (%p1243_p1), [#allocation11], 4294967280 }
  0x3e   : > { %305 = sfence }
  0x3f   : > { %p336_p8 = scmp.lt.s32.totalorder %s1152_s22, 1  ;;  %s330_s11 = scalar_lea.vmem [#allocation12], %s1325_s18 }
  0x40   : > { %p810_p4 = scmp.ne.s32.totalorder %s1148_s21, 0 }
  0x41   : > { %s1349_s7 = scalar_select %p336_p8, %s1152_s22, 1 }
  0x42   : > { %342 = sbr.rel (%p810_p4) target bundleno = 73 (0x49), region = 56 }
  0x43   : > { %s338_s9 = scalar_lea.vmem %s1527_s5, %s1349_s7 }
  0x47   : > { %vm343_vm0 = vcmask 0   ;;  %v1168_v0 = vmov 0.0  }
  0x48   : > { %344 = vst.msk [vmem:[#allocation2] sm:$0x1] %vm343_vm0, %v1168_v0 }
  0x49 PF: > { %s347_s28 = sld [smem:[#allocation9]]  ;;  %v1359_v1 = vld [vmem:[%s289_s17] sm:$0xf]  ;;  %vm464_vm1 = vcmask 1040384   ;;  %vm466_vm2 = vcmask 1041408   ;;  %vm468_vm3 = vcmask 1042432  }
  0x4a   : > { %s811_s29 = sld [smem:[#allocation9 + $0x1]]  ;;  %vm596_vm4 = vcmask 1043456   ;;  %vm609_vm5 = vcmask 0   ;;  %p849_p1 = scmp.ne.s32.totalorder %s1148_s21, 1 }
  0x4b   : > { %s812_s27 = sld [smem:[#allocation9 + $0x2]] }
  0x4c   : > { %s813_s12 = sld [smem:[#allocation9 + $0x3]] }
  0x4d   : > { %s1357_s13 = sld [smem:[#allocation10]] }
  0x4e   : > { %s814_s14 = sld [smem:[#allocation9 + $0x80]] }
  0x4f   : > { %s815_s3 = sld [smem:[#allocation9 + $0x81]]  ;;  %v348_v2 = vstv %s347_s28 }
  0x50   : > { %v351_v3 = vstv %s811_s29  ;;  %s816_s26 = sld [smem:[#allocation9 + $0x82]]  ;;  %v349_v6 = vmul.f32 %v348_v2, %v1359_v1 }
  0x51   : > { %v352_v4 = vmul.f32 %v351_v3, %v1359_v1  ;;  %v358_v5 = vstv %s812_s27  ;;  %s817_s15 = sld [smem:[#allocation9 + $0x83]] }
  0x52   : > { %s1362_s2 = sld [smem:[#allocation10 + $0x1]]  ;;  %v359_v8 = vmul.f32 %v358_v5, %v1359_v1  ;;  %v365_v9 = vstv %s813_s12 }
  0x53   : > { %v354_v7 = vrot.slane %v352_v4, 1  ;;  %s819_s10 = sld [smem:[#allocation9 + $0x100]]  ;;  %v366_v12 = vmul.f32 %v365_v9, %v1359_v1  ;;  %v372_v38 = vstv %s1357_s13 }
  0x54   : > { %v375_v10 = vstv %s814_s14  ;;  %s820_s30 = sld [smem:[#allocation9 + $0x101]]  ;;  %v361_v17 = vrot.slane %v359_v8, 2 }
  0x55   : > { %v378_v11 = vstv %s815_s3  ;;  %s821_s17 = sld [smem:[#allocation9 + $0x102]]  ;;  %v376_v13 = vmul.f32 %v375_v10, %v1359_v1  ;;  %v356_v16 = vadd.f32 %v354_v7, %v349_v6  ;;  %v368_v24 = vrot.slane %v366_v12, 3 }
  0x56   : > { %v379_v14 = vmul.f32 %v378_v11, %v1359_v1  ;;  %v385_v15 = vstv %s816_s26  ;;  %s822_s8 = sld [smem:[#allocation9 + $0x103]] }
  0x57   : > { %v386_v18 = vmul.f32 %v385_v15, %v1359_v1  ;;  %v392_v19 = vstv %s817_s15  ;;  %s1370_s28 = sld [smem:[#allocation10 + $0x2]]  ;;  %v363_v28 = vadd.f32 %v361_v17, %v356_v16 }
  0x58   : > { %v381_v20 = vrot.slane %v379_v14, 1  ;;  %v393_v21 = vmul.f32 %v392_v19, %v1359_v1  ;;  %s1373_s29 = sld [smem:[#allocation9 + $0x180]]  ;;  %v399_v35 = vstv %s1362_s2 }
  0x59   : > { %v388_v22 = vrot.slane %v386_v18, 2  ;;  %v402_v23 = vstv %s819_s10  ;;  %s1375_s27 = sld [smem:[#allocation9 + $0x181]]  ;;  %v370_v42 = vadd.f32 %v368_v24, %v363_v28 }
  0x5a   : > { %v383_v25 = vadd.f32 %v381_v20, %v376_v13  ;;  %v395_v26 = vrot.slane %v393_v21, 3  ;;  %v405_v27 = vstv %s820_s30  ;;  %s826_s12 = sld [smem:[#allocation9 + $0x182]]  ;;  %v403_v29 = vmul.f32 %v402_v23, %v1359_v1 }
  0x5b   : > { %v406_v30 = vmul.f32 %v405_v27, %v1359_v1  ;;  %v412_v31 = vstv %s821_s17  ;;  %s827_s14 = sld [smem:[#allocation9 + $0x183]]  ;;  %v373_v56 = vadd.f32 %v372_v38, %v370_v42 }
  0x5c   : > { %v390_v32 = vadd.f32 %v388_v22, %v383_v25  ;;  %v413_v33 = vmul.f32 %v412_v31, %v1359_v1  ;;  %v419_v34 = vstv %s822_s8  ;;  %s1380_s3 = sld [smem:[#allocation10 + $0x3]] }
  0x5d   : > { %v408_v36 = vrot.slane %v406_v30, 1  ;;  %v420_v37 = vmul.f32 %v419_v34, %v1359_v1  ;;  %s1384_s26 = sld [smem:[#allocation9 + $0x200]]  ;;  %v426_v53 = vstv %s1370_s28 }
  0x5e   : > { %v397_v39 = vadd.f32 %v395_v26, %v390_v32  ;;  %v415_v40 = vrot.slane %v413_v33, 2  ;;  %v429_v41 = vstv %s1373_s29  ;;  %s1388_s15 = sld [smem:[#allocation9 + $0x201]] }
  0x5f   : > { %v410_v43 = vadd.f32 %v408_v36, %v403_v29  ;;  %v422_v44 = vrot.slane %v420_v37, 3  ;;  %v432_v45 = vstv %s1375_s27  ;;  %s831_s10 = sld [smem:[#allocation9 + $0x202]]  ;;  %v430_v47 = vmul.f32 %v429_v41, %v1359_v1 }
  0x60   : > { %v400_v46 = vadd.f32 %v399_v35, %v397_v39  ;;  %v433_v48 = vmul.f32 %v432_v45, %v1359_v1  ;;  %v439_v49 = vstv %s826_s12  ;;  %s1393_s2 = sld [smem:[#allocation9 + $0x203]] }
  0x61   : > { %v417_v50 = vadd.f32 %v415_v40, %v410_v43  ;;  %v440_v51 = vmul.f32 %v439_v49, %v1359_v1  ;;  %v446_v52 = vstv %s827_s14  ;;  %s1396_s13 = sld [smem:[#allocation10 + $0x4]] }
  0x62   : > { %v435_v54 = vrot.slane %v433_v48, 1  ;;  %v447_v55 = vmul.f32 %v446_v52, %v1359_v1  ;;  %s1400_s30 = sld [smem:[#allocation9 + $0x280]]  ;;  %v456_v61 = vrot.slane %v400_v46, 7  ;;  %v453_v7 = vstv %s1380_s3 }
  0x63   : > { %v424_v57 = vadd.f32 %v422_v44, %v417_v50  ;;  %v442_v58 = vrot.slane %v440_v51, 2  ;;  %s1402_s17 = sld [smem:[#allocation9 + $0x281]]  ;;  %v471_v62 = vstv %s1384_s26 }
  0x64   : > { %v437_v59 = vadd.f32 %v435_v54, %v430_v47  ;;  %v449_v60 = vrot.slane %v447_v55, 3  ;;  %s1405_s8 = sld [smem:[#allocation9 + $0x282]]  ;;  %v474_v0 = vstv %s1388_s15  ;;  %v472_v9 = vmul.f32 %v471_v62, %v1359_v1 }
  0x65   : > { %v427_v63 = vadd.f32 %v426_v53, %v424_v57  ;;  %v481_v2 = vstv %s831_s10  ;;  %s1408_s28 = sld [smem:[#allocation9 + $0x283]]  ;;  %v475_v4 = vmul.f32 %v474_v0, %v1359_v1  ;;  %v465_v11 = vsel %vm464_vm1, %v373_v56, %v456_v61 }
  0x66   : > { %v444_v3 = vadd.f32 %v442_v58, %v437_v59  ;;  %v482_v5 = vmul.f32 %v481_v2, %v1359_v1  ;;  %v488_v6 = vstv %s1393_s2  ;;  %s1413_s29 = sld [smem:[#allocation10 + $0x5]] }
  0x67   : > { %v459_v8 = vrot.slane %v427_v63, 6  ;;  %s1417_s27 = sld [smem:[#allocation9 + $0x300]]  ;;  %v477_v12 = vrot.slane %v475_v4, 1  ;;  %v489_v15 = vmul.f32 %v488_v6, %v1359_v1  ;;  %v495_v58 = vstv %s1396_s13 }
  0x68   : > { %v451_v10 = vadd.f32 %v449_v60, %v444_v3  ;;  %v498_v13 = vstv %s1400_s30  ;;  %s1421_s12 = sld [smem:[#allocation9 + $0x301]]  ;;  %v484_v14 = vrot.slane %v482_v5, 2 }
  0x69   : > { %v501_v16 = vstv %s1402_s17  ;;  %s1425_s14 = sld [smem:[#allocation9 + $0x302]]  ;;  %v499_v18 = vmul.f32 %v498_v13, %v1359_v1  ;;  %v467_v21 = vsel %vm466_vm2, %v465_v11, %v459_v8  ;;  %v479_v22 = vadd.f32 %v477_v12, %v472_v9 }
  0x6a   : > { %v454_v17 = vadd.f32 %v453_v7, %v451_v10  ;;  %v502_v19 = vmul.f32 %v501_v16, %v1359_v1  ;;  %v508_v20 = vstv %s1405_s8  ;;  %s1430_s3 = sld [smem:[#allocation9 + $0x303]]  ;;  %v491_v34 = vrot.slane %v489_v15, 3  ;;  %v345_v15 = vld [vmem:[%s279_s6] sm:$0xf] }
  0x6b   : > { %v509_v23 = vmul.f32 %v508_v20, %v1359_v1  ;;  %v515_v24 = vstv %s1408_s28  ;;  %s1435_s26 = sld [smem:[#allocation10 + $0x6]]  ;;  %v486_v33 = vadd.f32 %v484_v14, %v479_v22 }
  0x6c   : > { %v462_v25 = vrot.slane %v454_v17, 5  ;;  %v504_v26 = vrot.slane %v502_v19, 1  ;;  %v516_v27 = vmul.f32 %v515_v24, %v1359_v1  ;;  %s1438_s15 = sld [smem:[#allocation9 + $0x380]]  ;;  %v522_v41 = vstv %s1413_s29 }
  0x6d   : > { %v511_v28 = vrot.slane %v509_v23, 2  ;;  %v525_v29 = vstv %s1417_s27  ;;  %s1441_s10 = sld [smem:[#allocation9 + $0x381]]  ;;  %v493_v50 = vadd.f32 %v491_v34, %v486_v33 }
  0x6e   : > { %v469_v30 = vsel %vm468_vm3, %v467_v21, %v462_v25  ;;  %v506_v31 = vadd.f32 %v504_v26, %v499_v18  ;;  %v518_v32 = vrot.slane %v516_v27, 3  ;;  %s1444_s2 = sld [smem:[#allocation9 + $0x382]]  ;;  %v528_v35 = vstv %s1421_s12 }
  0x6f   : > { %v535_v36 = vstv %s1425_s14  ;;  %s847_s30 = sld [smem:[#allocation9 + $0x383]]  ;;  %v526_v38 = vmul.f32 %v525_v29, %v1359_v1  ;;  %v529_v39 = vmul.f32 %v528_v35, %v1359_v1  ;;  %v597_v43 = vsel %vm596_vm4, %v469_v30, 0.0 }
  0x70   : > { %v513_v37 = vadd.f32 %v511_v28, %v506_v31  ;;  %v536_v40 = vmul.f32 %v535_v36, %v1359_v1  ;;  %v542_v42 = vstv %s1430_s3  ;;  %598 = vadd.xlane.f32.xlu0 %v597_v43  ;;  %s848_s17 = sld [smem:[#allocation10 + $0x7]]  ;;  %v591_v3 = vmul.f32 1.442695, %v469_v30  ;;  %v595_v28 = vld [vmem:[#allocation2] sm:$0x1] }
  0x71   : > { %v531_v45 = vrot.slane %v529_v39, 1  ;;  %v543_v47 = vmul.f32 %v542_v42, %v1359_v1  ;;  %v549_v62 = vstv %s1435_s26  ;;  %v496_v4 = vadd.f32 %v495_v58, %v493_v50 }
  0x72   : > { %v520_v44 = vadd.f32 %v518_v32, %v513_v37  ;;  %v538_v46 = vrot.slane %v536_v40, 2  ;;  %v552_v48 = vstv %s1438_s15  ;;  %962 = vpow2.f32 %v591_v3 }
  0x73   : > { %v555_v49 = vstv %s1441_s10  ;;  %v533_v52 = vadd.f32 %v531_v45, %v526_v38  ;;  %v545_v53 = vrot.slane %v543_v47, 3  ;;  %v553_v54 = vmul.f32 %v552_v48, %v1359_v1 }
  0x74   : > { %v523_v51 = vadd.f32 %v522_v41, %v520_v44  ;;  %v556_v55 = vmul.f32 %v555_v49, %v1359_v1  ;;  %v562_v56 = vstv %s1444_s2 }
  0x75   : > { %v569_v57 = vstv %s847_s30  ;;  %v540_v59 = vadd.f32 %v538_v46, %v533_v52  ;;  %v563_v60 = vmul.f32 %v562_v56, %v1359_v1 }
  0x76   : > { %v570_v61 = vmul.f32 %v569_v57, %v1359_v1  ;;  %v558_v63 = vrot.slane %v556_v55, 1  ;;  %v579_v7 = vrot.slane %v523_v51, 7  ;;  %v576_v10 = vstv %s848_s17 }
  0x77   : > { %v547_v0 = vadd.f32 %v545_v53, %v540_v59  ;;  %v565_v2 = vrot.slane %v563_v60, 2 }
  0x78   : > { %v560_v5 = vadd.f32 %v558_v63, %v553_v54  ;;  %v572_v6 = vrot.slane %v570_v61, 3  ;;  %v587_v13 = vsel %vm464_vm1, %v496_v4, %v579_v7  ;;  %v963_v17 = vpop.eup %962 }
  0x79   : > { %v550_v8 = vadd.f32 %v549_v62, %v547_v0 }
  0x7a   : > { %v567_v9 = vadd.f32 %v565_v2, %v560_v5 }
  0x7b   : > { %v582_v11 = vrot.slane %v550_v8, 6 }
  0x7c   : > { %v574_v12 = vadd.f32 %v572_v6, %v567_v9 }
  0x7d   : > { %v588_v14 = vsel %vm466_vm2, %v587_v13, %v582_v11 }
  0x7e   : > { %v577_v1 = vadd.f32 %v576_v10, %v574_v12 }
  0x80   : > { %v585_v16 = vrot.slane %v577_v1, 5 }
  0x82   : > { %v589_v18 = vsel %vm468_vm3, %v588_v14, %v585_v16 }
  0x83   : > { %v590_v19 = vadd.f32 %v589_v18, %v345_v15 }
  0x85   : > { %v593_v20 = vmul.f32 %v963_v17, %v590_v19 }
  0x87   : > { %594 = vst [vmem:[%s330_s11] sm:$0xf] %v593_v20 }
  0xe3   : > { %v599_v21 = vpop.xlane.xlu0 %598 }
  0xe4   : > { %v600_v22 = vrot.slane %v599_v21, 4 }
  0xe6   : > { %v601_v23 = vadd.f32 %v600_v22, %v599_v21 }
  0xe8   : > { %v602_v24 = vrot.slane %v601_v23, 2 }
  0xea   : > { %v603_v25 = vadd.f32 %v602_v24, %v601_v23 }
  0xec   : > { %v604_v26 = vrot.slane %v603_v25, 1 }
  0xee   : > { %v605_v27 = vadd.f32 %v604_v26, %v603_v25 }
  0xf0   : > { %855 = vpush %v605_v27 }
 0x121   : > { %s856_s13 = spop %855  ;;  %614 = sbr.rel (%p849_p1) target bundleno = 302 (0x12e), region = 60 }
 0x122   : > { %v607_v29 = vstv %s856_s13 }
 0x123   : > { %v608_v30 = vadd.f32 %v607_v29, %v595_v28 }
 0x125   : > { %610 = vst.msk [vmem:[#allocation2] sm:$0x1] %vm609_vm5, %v608_v30 }
 0x12c   : > { %v615_v31 = vld [vmem:[#allocation2] sm:$0x1] }
 0x12d   : > { %616 = vst.msk [vmem:[%s338_s9] sm:$0x1] %vm609_vm5, %v615_v31 }
 0x12e PF: > { %s851_s29 = sshll.u32 %s1152_s22, 1  ;;  %s635_s12 = sshll.u32 %s330_s11, 4  ;;  %s636_s12 = int_to_ptr.vmem [resolvable:$true] %s635_s12 }
 0x12f   : > { %s631_s27 = sadd.s32 %s1148_s21, %s851_s29  ;;  %s1553_s15 = sld [smem:[#allocation25_spill]] }
 0x130   : > { %s852_s14 = sshll.u32 %s631_s27, 2  ;;  %s618_s7 = scalar_lea.sflag [#allocation5], %s1322_s4 }
 0x135   : > { %s633_s10 = scalar_lea.hbm %s1553_s15, %s852_s14  ;;  %s1074_s18 = scalar_lea.hbm %s1553_s15, 16 }
 0x136   : > { %s637_s2 = sshll.u32 %s633_s10, 4  ;;  %s638_s2 = int_to_ptr.hbm [resolvable:$true] %s637_s2 }
 0x137   : > { %s1068_s9 = sshra.s32 %s638_s2, 4  ;;  %s1069_s9 = int_to_ptr.hbm [resolvable:$true] %s1068_s9 }
 0x138   : > { %s1070_s30 = scalar_lea.hbm %s1069_s9, 4  ;;  %p1075_p13 = scmp.lt.s32.totalorder %s1069_s9, %s1553_s15 }
 0x139   : > { %p1071_p10 = scmp.ne.s32.totalorder %s1069_s9, %s1070_s30  ;;  %p1076_p0 = scmp.lt.s32.totalorder %s1074_s18, %s1070_s30 }
 0x13b   : > { %p1072_p11 = pnand %p1071_p10, %p1294_p5  ;;  %p1077_p3 = por %p1076_p0, %p1075_p13 }
 0x13d   : > { %p1073_p12 = pneg %p1072_p11 }
 0x13f   : > { %p1078_p7 = pnand %p1077_p3, %p1073_p12 }
 0x141   : > { %1081 = shalt.err (!%p1078_p7)
}
 0x142   : > { %869 = dma.vmem_to_hbm [thread:$0]  (%p1294_p5), %s636_s12, 64, %s638_s2, %s618_s7  }
 0x143 PF: > { %s1554_s4 = sld [smem:[#allocation18_spill]]  ;;  %p894_p9 = scmp.ge.s32.totalorder %s1164_s25, 2 }
 0x145   : > { %p886_p2 = pnand %p894_p9, %p1258_p6 }
 0x147   : > { %p887_p8 = pneg %p886_p2 }
 0x149   : > { %s652_s6 = sand.u32 1, %s1554_s4  }
 0x14a   : > { %s653_s8 = scalar_lea.sflag [#allocation5], %s652_s6 }
 0x14b   : > { %1131 = dma.done.wait (%p887_p8), %s653_s8, 64  }
 0x14c   : > { %1133 = vsyncadd (%p887_p8), %s653_s8, 4294967232  ;;  %s27_s25 = sadd.s32 1, %s1164_s25   ;;  %s1556_s28 = sld [smem:[#allocation20_spill]] }
 0x14d   : > { %p24_p4 = scmp.ge.s32.totalorder %s27_s25, 6   ;;  %s1557_s29 = sld [smem:[#allocation22_spill]] }
 0x14e   : > { %s1558_s18 = smov %s1140_s19  ;;  %s1559_s19 = smov %s1144_s20 }
 0x14f   : > { %s1560_s20 = smov %s1307_s16  ;;  %s1561_s21 = smov %s1156_s23 }
 0x150   : > { %s1562_s22 = smov %s1160_s24  ;;  %26 = sbr.rel (!%p24_p4) target bundleno = 15 (0xf), region = 123 }
 0x152   : > { %s1563_s23 = smov %s1556_s28 }
 0x153   : > { %s1564_s24 = smov %s1557_s29 }
 0x155   :  { %665 = vsyncpa [#allocation4], 1 }
 0x156   :  { %667 = vsyncpa [#allocation4 + $0x1], 1 }
 0x157   :  { %668 = vsyncpa [#allocation8], 1 }
 0x158   :  { %670 = vsyncpa [#allocation8 + $0x1], 1 }
 0x159   :  { %671 = vsyncpa [#allocation5], 1 }
 0x15a   :  { %673 = vsyncpa [#allocation5 + $0x1], 1 }
 0x15b   :  { %674 = vsyncpa [#allocation6], 1 }
 0x15c   :  { %676 = vsyncpa [#allocation6 + $0x1], 1 }
 0x15d   :  { %677 = vsyncpa [#allocation11], 1 }

</bundles_post_ra>
